<compile_context>
chip_gen: v6e
topology: v6e:2x2x1
jax: 0.10.0
libtpu: 0.0.40
codegen_flags: <defaults>
</compile_context>

<pallas_src>
import jax
import jax.numpy as jnp
from jax.experimental import pallas as pl
from jax.experimental.pallas import tpu as pltpu

_GROUP = 16           # batch elements packed per 128-lane row (128 / 8 features)
_LANES = _GROUP * 8   # 128


def _round_up(a, m):
    return (a + m - 1) // m * m


def _cdiv(a, b):
    return -(-a // b)


def mlp_kernel(x_ref, w1_ref, b1_ref, w2_ref, b2_ref, w3_ref, b3_ref, o_ref):
    """One batch tile in packed layout: row r, lane 8*g + i <-> (batch 16*r + g, feat i)."""
    x = x_ref[...]                                                        # (TR, 128)
    # Layer 1 (MXU): tanh(x @ kron(I16, W1) + tile(b1))      -> (TR, 128)
    z1 = jnp.dot(x, w1_ref[...], preferred_element_type=jnp.float32) + b1_ref[...]
    h1 = jnp.tanh(z1)
    # Layer 2 (MXU): sigmoid(h1 @ kron(I16, W2pad) + tile(b2)) -> (TR, 128)
    z2 = jnp.dot(h1, w2_ref[...], preferred_element_type=jnp.float32) + b2_ref[...]
    h2 = 0.5 * jnp.tanh(0.5 * z2) + 0.5         # sigmoid via one EUP op
    # Layer 3 (MXU): h2 @ kron(I16, W3pad) + b3               -> (TR, 16)
    z3 = jnp.dot(h2, w3_ref[...], preferred_element_type=jnp.float32)
    o_ref[...] = (z3 + b3_ref[0]).astype(o_ref.dtype)


def neural_net_forward(x, params, *, block_b=32768):
    """Fused MLP forward pass.

    x:      (B, 8) float32 (same layout as the PyTorch module input)
    params: w1 (8,8), b1 (8,), w2 (8,6), b2 (6,), w3 (6,1), b3 (1,)
            with weights stored as (in_features, out_features)
    returns (B, 1) float32
    """
    B = x.shape[0]
    assert x.shape[1] == 8
    f32 = jnp.float32
    eye = jnp.eye(_GROUP, dtype=f32)

    # ---- fold tiny weights into block-diagonal 128-wide forms (one-time, ~100 KiB) ----
    w1_big = jnp.kron(eye, params["w1"].astype(f32))                       # (128, 128)
    b1_big = jnp.tile(params["b1"].astype(f32), _GROUP).reshape(1, _LANES)

    w2p = jnp.zeros((8, 8), f32).at[:, :6].set(params["w2"].astype(f32))
    b2p = jnp.zeros((8,), f32).at[:6].set(params["b2"].astype(f32))
    w2_big = jnp.kron(eye, w2p)                                            # (128, 128)
    b2_big = jnp.tile(b2p, _GROUP).reshape(1, _LANES)

    # Rows 6,7 of every 8-block are zero -> layer-2 pad lanes are inert.
    w3p = jnp.zeros((8, 1), f32).at[:6, :].set(params["w3"].astype(f32))
    w3_big = jnp.kron(eye, w3p)                                            # (128, 16)
    b3 = params["b3"].reshape(1).astype(f32)                               # (1,) -> SMEM

    # ---- pack batch onto lanes: contiguous reshape (free); copy only if B%16!=0 ----
    xf = x.astype(f32)
    b_pad = _round_up(B, _GROUP)
    if b_pad != B:
        xf = jnp.zeros((b_pad, 8), f32).at[:B].set(xf)
    rows = b_pad // _GROUP
    xp = xf.reshape(rows, _LANES)                                          # (rows, 128)

    # ---- tile selection: big tiles, clamped for small B, even grid for v7x ----
    target_rows = max(8, block_b // _GROUP)
    if rows <= target_rows:
        tile_rows = _round_up(rows, 8)
        grid_n = 1
    else:
        grid_n = _cdiv(rows, target_rows)
        if grid_n % 2:
            grid_n += 1                         # keep both v7x TensorCores busy
        tile_rows = _round_up(_cdiv(rows, grid_n), 8)
        grid_n = _cdiv(rows, tile_rows)         # ragged last tile handled by Pallas

    const = lambda i: (0, 0)                    # weights resident across grid steps

    out_packed = pl.pallas_call(
        mlp_kernel,
        out_shape=jax.ShapeDtypeStruct((rows, _GROUP), f32),
        grid=(grid_n,),
        in_specs=[
            pl.BlockSpec((tile_rows, _LANES), lambda i: (i, 0)),   # activations
            pl.BlockSpec((_LANES, _LANES), const),                 # W1 block-diag
            pl.BlockSpec((1, _LANES), const),                      # b1 tiled
            pl.BlockSpec((_LANES, _LANES), const),                 # W2 block-diag
            pl.BlockSpec((1, _LANES), const),                      # b2 tiled
            pl.BlockSpec((_LANES, _GROUP), const),                 # W3 block-diag
            pl.BlockSpec(memory_space=pltpu.MemorySpace.SMEM),     # b3 scalar
        ],
        out_specs=pl.BlockSpec((tile_rows, _GROUP), lambda i: (i, 0)),
        compiler_params=pltpu.CompilerParams(
            dimension_semantics=("parallel",),    # batch tiles -> both TCs on v7x
            vmem_limit_bytes=32 * 1024 * 1024,    # headroom; ~8 MiB used at default tile
        ),
    )(xp, w1_big, b1_big, w2_big, b2_big, w3_big, b3)

    # (rows, 16) row-major IS the flat batch order -> free reshape back.
    return out_packed.reshape(b_pad)[:B].reshape(B, 1)


def init_params(key):
    """Deterministic parameter init (shapes match the PyTorch module)."""
    ks = jax.random.split(key, 6)

    def uniform_linear(kw, kb, fan_in, fan_out):
        # Mimic PyTorch nn.Linear default: U(-1/sqrt(fan_in), 1/sqrt(fan_in))
        bound = 1.0 / jnp.sqrt(jnp.float32(fan_in))
        w = jax.random.uniform(kw, (fan_in, fan_out), jnp.float32, -bound, bound)
        b = jax.random.uniform(kb, (fan_out,), jnp.float32, -bound, bound)
        return w, b

    w1, b1 = uniform_linear(ks[0], ks[1], 8, 8)
    w2, b2 = uniform_linear(ks[2], ks[3], 8, 6)
    w3, b3 = uniform_linear(ks[4], ks[5], 6, 1)
    return {"w1": w1, "b1": b1, "w2": w2, "b2": b2, "w3": w3, "b3": b3}


def reference_forward(x, p):
    hp = jax.lax.Precision.HIGHEST
    h1 = jnp.tanh(jnp.dot(x, p["w1"], precision=hp) + p["b1"])
    h2 = jax.nn.sigmoid(jnp.dot(h1, p["w2"], precision=hp) + p["b2"])
    return jnp.dot(h2, p["w3"], precision=hp) + p["b3"]


if __name__ == "__main__":
    key = jax.random.PRNGKey(0)
    k_x1, k_x3, k_p = jax.random.split(key, 3)
    params = init_params(k_p)

    # Case 1: B % 16 == 0 (no pad copy), single large tile (default block_b).
    B1 = 2000
    x1 = jax.random.normal(k_x1, (B1, 8), dtype=jnp.float32)
    out1 = jax.block_until_ready(neural_net_forward(x1, params))
    ref1 = reference_forward(x1, params)
    assert out1.shape == (B1, 1)
    assert jnp.allclose(out1, ref1, atol=5e-4, rtol=5e-4), "case1 mismatch"

    # Case 2: small block_b -> multi-tile grid with a ragged last tile.
    out2 = jax.block_until_ready(neural_net_forward(x1, params, block_b=512))
    assert jnp.allclose(out2, ref1, atol=5e-4, rtol=5e-4), "case2 mismatch"

    # Case 3: B not a multiple of 16 -> exercises the (only-then) padding path.
    B3 = 77
    x3 = jax.random.normal(k_x3, (B3, 8), dtype=jnp.float32)
    out3 = jax.block_until_ready(neural_net_forward(x3, params, block_b=512))
    ref3 = reference_forward(x3, params)
    assert out3.shape == (B3, 1)
    assert jnp.allclose(out3, ref3, atol=5e-4, rtol=5e-4), "case3 mismatch"

    print("KERNEL_OK")
</pallas_src>

<mosaic_0001>
module attributes {stable_mosaic.version = 11 : i64} {
  func.func @mlp_kernel(%arg0: i32, %arg1: memref<128x128xf32, #tpu.memory_space<vmem>>, %arg2: memref<128x128xf32, #tpu.memory_space<vmem>>, %arg3: memref<1x128xf32, #tpu.memory_space<vmem>>, %arg4: memref<128x128xf32, #tpu.memory_space<vmem>>, %arg5: memref<1x128xf32, #tpu.memory_space<vmem>>, %arg6: memref<128x16xf32, #tpu.memory_space<vmem>>, %arg7: memref<1xf32, #tpu.memory_space<smem>>, %arg8: memref<128x16xf32, #tpu.memory_space<vmem>>) attributes {dimension_semantics = [#tpu.dimension_semantics<parallel>], iteration_bounds = array<i64: 1>, scalar_prefetch = 0 : i64, scratch_operands = 0 : i64, tpu.core_type = #tpu.core_type<tc>, window_params = [{transform_indices = @transform_0, window_bounds = array<i64: 128, 128>}, {pipeline_mode = #tpu.pipeline_mode<synchronous>, transform_indices = @transform_1, window_bounds = array<i64: 128, 128>}, {pipeline_mode = #tpu.pipeline_mode<synchronous>, transform_indices = @transform_2, window_bounds = array<i64: 1, 128>}, {pipeline_mode = #tpu.pipeline_mode<synchronous>, transform_indices = @transform_3, window_bounds = array<i64: 128, 128>}, {pipeline_mode = #tpu.pipeline_mode<synchronous>, transform_indices = @transform_4, window_bounds = array<i64: 1, 128>}, {pipeline_mode = #tpu.pipeline_mode<synchronous>, transform_indices = @transform_5, window_bounds = array<i64: 128, 16>}, {transform_indices = @transform_6, window_bounds = array<i64: 1>}, {transform_indices = @transform_7, window_bounds = array<i64: 128, 16>}]} {
    %c0 = arith.constant 0 : index
    %c0_0 = arith.constant 0 : index
    %0 = vector.load %arg1[%c0, %c0_0] : memref<128x128xf32, #tpu.memory_space<vmem>>, vector<128x128xf32>
    %c0_1 = arith.constant 0 : index
    %c0_2 = arith.constant 0 : index
    %1 = vector.load %arg2[%c0_1, %c0_2] : memref<128x128xf32, #tpu.memory_space<vmem>>, vector<128x128xf32>
    %cst = arith.constant dense<0.000000e+00> : vector<128x128xf32>
    %2 = tpu.matmul %0, %1, %cst {dimension_numbers = #tpu.dot_dimension_numbers<[1], [0], [0], [1], [0, 0, 1, 1], [], []>} : vector<128x128xf32>, vector<128x128xf32>, vector<128x128xf32> -> vector<128x128xf32>
    %c0_3 = arith.constant 0 : index
    %c0_4 = arith.constant 0 : index
    %3 = vector.load %arg3[%c0_3, %c0_4] : memref<1x128xf32, #tpu.memory_space<vmem>>, vector<1x128xf32>
    %4 = vector.broadcast %3 : vector<1x128xf32> to vector<128x128xf32>
    %5 = arith.addf %2, %4 : vector<128x128xf32>
    %6 = math.tanh %5 : vector<128x128xf32>
    %c0_5 = arith.constant 0 : index
    %c0_6 = arith.constant 0 : index
    %7 = vector.load %arg4[%c0_5, %c0_6] : memref<128x128xf32, #tpu.memory_space<vmem>>, vector<128x128xf32>
    %cst_7 = arith.constant dense<0.000000e+00> : vector<128x128xf32>
    %8 = tpu.matmul %6, %7, %cst_7 {dimension_numbers = #tpu.dot_dimension_numbers<[1], [0], [0], [1], [0, 0, 1, 1], [], []>} : vector<128x128xf32>, vector<128x128xf32>, vector<128x128xf32> -> vector<128x128xf32>
    %c0_8 = arith.constant 0 : index
    %c0_9 = arith.constant 0 : index
    %9 = vector.load %arg5[%c0_8, %c0_9] : memref<1x128xf32, #tpu.memory_space<vmem>>, vector<1x128xf32>
    %10 = vector.broadcast %9 : vector<1x128xf32> to vector<128x128xf32>
    %11 = arith.addf %8, %10 : vector<128x128xf32>
    %cst_10 = arith.constant 5.000000e-01 : f32
    %12 = vector.broadcast %cst_10 : f32 to vector<128x128xf32>
    %13 = arith.mulf %12, %11 : vector<128x128xf32>
    %14 = math.tanh %13 : vector<128x128xf32>
    %cst_11 = arith.constant 5.000000e-01 : f32
    %15 = vector.broadcast %cst_11 : f32 to vector<128x128xf32>
    %16 = arith.mulf %15, %14 : vector<128x128xf32>
    %cst_12 = arith.constant 5.000000e-01 : f32
    %17 = vector.broadcast %cst_12 : f32 to vector<128x128xf32>
    %18 = arith.addf %16, %17 : vector<128x128xf32>
    %c0_13 = arith.constant 0 : index
    %c0_14 = arith.constant 0 : index
    %19 = vector.load %arg6[%c0_13, %c0_14] : memref<128x16xf32, #tpu.memory_space<vmem>>, vector<128x16xf32>
    %cst_15 = arith.constant dense<0.000000e+00> : vector<128x16xf32>
    %20 = tpu.matmul %18, %19, %cst_15 {dimension_numbers = #tpu.dot_dimension_numbers<[1], [0], [0], [1], [0, 0, 1, 1], [], []>} : vector<128x128xf32>, vector<128x16xf32>, vector<128x16xf32> -> vector<128x16xf32>
    %c0_16 = arith.constant 0 : index
    %21 = memref.load %arg7[%c0_16] : memref<1xf32, #tpu.memory_space<smem>>
    %22 = vector.broadcast %21 : f32 to vector<128x16xf32>
    %23 = arith.addf %20, %22 : vector<128x16xf32>
    %c0_17 = arith.constant 0 : index
    %c0_18 = arith.constant 0 : index
    %24 = vector.load %arg8[%c0_17, %c0_18] : memref<128x16xf32, #tpu.memory_space<vmem>>, vector<128x16xf32>
    tpu.vector_store %arg8[%c0_17, %c0_18], %23 {strides = array<i32>} : memref<128x16xf32, #tpu.memory_space<vmem>>, vector<128x16xf32>,
    return
  }
  func.func @transform_0(%arg0: i32) -> (i32, i32) {
    %c0_i32 = arith.constant 0 : i32
    %c0_i32_0 = arith.constant 0 : i32
    return %arg0, %c0_i32 : i32, i32
  }
  func.func @transform_1(%arg0: i32) -> (i32, i32) {
    %c0_i32 = arith.constant 0 : i32
    %c0_i32_0 = arith.constant 0 : i32
    %c0_i32_1 = arith.constant 0 : i32
    return %c0_i32, %c0_i32_0 : i32, i32
  }
  func.func @transform_2(%arg0: i32) -> (i32, i32) {
    %c0_i32 = arith.constant 0 : i32
    %c0_i32_0 = arith.constant 0 : i32
    %c0_i32_1 = arith.constant 0 : i32
    return %c0_i32, %c0_i32_0 : i32, i32
  }
  func.func @transform_3(%arg0: i32) -> (i32, i32) {
    %c0_i32 = arith.constant 0 : i32
    %c0_i32_0 = arith.constant 0 : i32
    %c0_i32_1 = arith.constant 0 : i32
    return %c0_i32, %c0_i32_0 : i32, i32
  }
  func.func @transform_4(%arg0: i32) -> (i32, i32) {
    %c0_i32 = arith.constant 0 : i32
    %c0_i32_0 = arith.constant 0 : i32
    %c0_i32_1 = arith.constant 0 : i32
    return %c0_i32, %c0_i32_0 : i32, i32
  }
  func.func @transform_5(%arg0: i32) -> (i32, i32) {
    %c0_i32 = arith.constant 0 : i32
    %c0_i32_0 = arith.constant 0 : i32
    %c0_i32_1 = arith.constant 0 : i32
    return %c0_i32, %c0_i32_0 : i32, i32
  }
  func.func @transform_6(%arg0: i32) -> i32 {
    %c0_i32 = arith.constant 0 : i32
    %c0_i32_0 = arith.constant 0 : i32
    return %c0_i32 : i32
  }
  func.func @transform_7(%arg0: i32) -> (i32, i32) {
    %c0_i32 = arith.constant 0 : i32
    %c0_i32_0 = arith.constant 0 : i32
    return %arg0, %c0_i32 : i32, i32
  }
}

</mosaic_0001>

<bundles_post_ra>
// kernel: tpu_custom_call.1
= control target key start
LH: loop header
LB: loop body
LE: loop exit
PB: predicated region body
PF: predicated region fallthrough
CT: control target
= control target key end

     0   :  { %13 = vsyncpa [#allocation4], 0  ;;  %s1338_s0 = inlined_call_operand.vmem [shape: f32[125,128], index: 0, kind: input, shape index: {}]   ;;  %s1339_s1 = inlined_call_operand.hbm [shape: f32[128,128], index: 1, kind: input, shape index: {}]   ;;  %s1340_s2 = inlined_call_operand.vmem [shape: f32[1,128], index: 2, kind: input, shape index: {}]   ;;  %s1341_s3 = inlined_call_operand.hbm [shape: f32[128,128], index: 3, kind: input, shape index: {}]   ;;  %s1342_s4 = inlined_call_operand.vmem [shape: f32[1,128], index: 4, kind: input, shape index: {}]   ;;  %s1343_s5 = inlined_call_operand.vmem [shape: f32[128,16], index: 5, kind: input, shape index: {}]   ;;  %s1344_s6 = inlined_call_operand.<no memory space> [shape: f32[1], index: 6, kind: input, shape index: {}]   ;;  %s1345_s7 = inlined_call_operand.vmem [shape: f32[125,16], index: 7, kind: output, shape index: {}]  }
   0x1   :  { %14 = vsyncpa [#allocation6], 0  ;;  %s1083_s24 = smov [#allocation3]  }
   0x2   :  { %s22_s25 = sshll.u32 %s1083_s24, 4  ;;  %s23_s25 = int_to_ptr.vmem [resolvable:$true] %s22_s25 }
   0x3   :  { %s1047_s26 = scalar_lea.vmem %s23_s25, 2048  ;;  %p1052_p1 = scmp.lt.s32.totalorder %s23_s25, %s23_s25 }
   0x4   :  { %p1048_p0 = scmp.ne.s32.totalorder %s23_s25, %s1047_s26  ;;  %p1053_p2 = scmp.lt.s32.totalorder %s1047_s26, %s1047_s26 }
   0x6   :  { %p1054_p3 = por %p1053_p2, %p1052_p1 }
   0x8   :  { %p1055_p4 = pnand %p1054_p3, %p1048_p0 }
   0xa   :  { %1058 = shalt.err (!%p1055_p4)
}
   0xb   :  { %s1084_s27 = smov 128   ;;  %s1085_s28 = smov 8  }
   0xc   :  { %28 = dma.hbm_to_vmem [thread:$0]  %s1339_s1, 2048, %s23_s25, [#allocation4], %s1084_s27, %s1084_s27, %s1085_s28  }
   0xd   :  { %s1086_s8 = smov [#allocation5]  }
   0xe   :  { %s36_s9 = sshll.u32 %s1086_s8, 4  ;;  %s37_s9 = int_to_ptr.vmem [resolvable:$true] %s36_s9 }
   0xf   :  { %s1067_s10 = scalar_lea.vmem %s37_s9, 2048  ;;  %p1072_p6 = scmp.lt.s32.totalorder %s37_s9, %s37_s9 }
  0x10   :  { %p1068_p5 = scmp.ne.s32.totalorder %s37_s9, %s1067_s10  ;;  %p1073_p7 = scmp.lt.s32.totalorder %s1067_s10, %s1067_s10 }
  0x12   :  { %p1074_p8 = por %p1073_p7, %p1072_p6 }
  0x14   :  { %p1075_p9 = pnand %p1074_p8, %p1068_p5 }
  0x16   :  { %1078 = shalt.err (!%p1075_p9)
}
  0x17   :  { %42 = dma.hbm_to_vmem [thread:$0]  %s1341_s3, 2048, %s37_s9, [#allocation6], %s1084_s27, %s1084_s27, %s1085_s28  }
  0x18   :  { %1079 = dma.done.wait [#allocation4], 2048  }
  0x19   :  { %1080 = vsyncadd [#allocation4], 4294965248 }
  0x1a   :  { %1081 = dma.done.wait [#allocation6], 2048  }
  0x1b   :  { %1082 = vsyncadd [#allocation6], 4294965248  ;;  %v86_v0 = vld [vmem:[#allocation3 + $0x78] sm:$0xff]  ;;  %v85_v1 = vld [vmem:[#allocation3 + $0x70] sm:$0xff]  ;;  %vm650_vm0 = vcmask 130048  }
  0x1c   :  { %771 = vmatprep.subr.mxu0 %v86_v0  ;;  %v84_v2 = vld [vmem:[#allocation3 + $0x68] sm:$0xff]  ;;  %v83_v3 = vld [vmem:[#allocation3 + $0x60] sm:$0xff]  ;;  %v82_v5 = vld [vmem:[#allocation3 + $0x58] sm:$0xff] }
  0x1d   :  { %772 = vmatpush3.msra.mxu0 %v86_v0  ;;  %v55_v4 = vld [vmem:[%s1338_s0] sm:$0xff]  ;;  %v81_v6 = vld [vmem:[#allocation3 + $0x50] sm:$0xff]  ;;  %v80_v7 = vld [vmem:[#allocation3 + $0x48] sm:$0xff] }
  0x1e   :  { %773 = vmatprep.subr.mxu0 %v85_v1  ;;  %803 = vmatprep.mubr.f32.mxu0 %v55_v4  ;;  %v270_v8 = vld [vmem:[#allocation5 + $0x78] sm:$0xff]  ;;  %v269_v9 = vld [vmem:[#allocation5 + $0x70] sm:$0xff]  ;;  %v79_v10 = vld [vmem:[#allocation3 + $0x40] sm:$0xff] }
  0x1f   :  { %774 = vmatpush3.msra.mxu0 %v85_v1  ;;  %827 = vmatprep.subr.mxu1 %v270_v8  ;;  %v268_v11 = vld [vmem:[#allocation5 + $0x68] sm:$0xff]  ;;  %v78_v12 = vld [vmem:[#allocation3 + $0x38] sm:$0xff]  ;;  %v267_v13 = vld [vmem:[#allocation5 + $0x60] sm:$0xff] }
  0x20   :  { %775 = vmatprep.subr.mxu0 %v84_v2  ;;  %828 = vmatpush3.msra.mxu1 %v270_v8  ;;  %v77_v14 = vld [vmem:[#allocation3 + $0x30] sm:$0xff]  ;;  %v266_v15 = vld [vmem:[#allocation5 + $0x58] sm:$0xff]  ;;  %v76_v16 = vld [vmem:[#allocation3 + $0x28] sm:$0xff] }
  0x21   :  { %776 = vmatpush3.msra.mxu0 %v84_v2  ;;  %829 = vmatprep.subr.mxu1 %v269_v9  ;;  %v265_v17 = vld [vmem:[#allocation5 + $0x50] sm:$0xff]  ;;  %v75_v18 = vld [vmem:[#allocation3 + $0x20] sm:$0xff]  ;;  %v74_v19 = vld [vmem:[#allocation3 + $0x18] sm:$0xff] }
  0x22   :  { %777 = vmatprep.subr.mxu0 %v83_v3  ;;  %830 = vmatpush3.msra.mxu1 %v269_v9  ;;  %v73_v20 = vld [vmem:[#allocation3 + $0x10] sm:$0xff]  ;;  %v72_v21 = vld [vmem:[#allocation3 + $0x8] sm:$0xff]  ;;  %v71_v22 = vld [vmem:[#allocation3] sm:$0xff] }
  0x23   :  { %778 = vmatpush3.msra.mxu0 %v83_v3  ;;  %831 = vmatprep.subr.mxu1 %v268_v11  ;;  %v56_v23 = vld [vmem:[%s1338_s0 + $0x8] sm:$0xff]  ;;  %v57_v24 = vld [vmem:[%s1338_s0 + $0x10] sm:$0xff]  ;;  %v58_v25 = vld [vmem:[%s1338_s0 + $0x18] sm:$0xff] }
  0x24   :  { %779 = vmatprep.subr.mxu0 %v82_v5  ;;  %832 = vmatpush3.msra.mxu1 %v268_v11  ;;  %v59_v26 = vld [vmem:[%s1338_s0 + $0x20] sm:$0xff]  ;;  %v60_v27 = vld [vmem:[%s1338_s0 + $0x28] sm:$0xff]  ;;  %v61_v28 = vld [vmem:[%s1338_s0 + $0x30] sm:$0xff] }
  0x25   :  { %780 = vmatpush3.msra.mxu0 %v82_v5  ;;  %833 = vmatprep.subr.mxu1 %v267_v13  ;;  %v62_v29 = vld [vmem:[%s1338_s0 + $0x38] sm:$0xff]  ;;  %v63_v30 = vld [vmem:[%s1338_s0 + $0x40] sm:$0xff]  ;;  %v64_v31 = vld [vmem:[%s1338_s0 + $0x48] sm:$0xff] }
  0x26   :  { %781 = vmatprep.subr.mxu0 %v81_v6  ;;  %834 = vmatpush3.msra.mxu1 %v267_v13  ;;  %v65_v32 = vld [vmem:[%s1338_s0 + $0x50] sm:$0xff]  ;;  %v66_v33 = vld [vmem:[%s1338_s0 + $0x58] sm:$0xff]  ;;  %v67_v34 = vld [vmem:[%s1338_s0 + $0x60] sm:$0xff] }
  0x27   :  { %782 = vmatpush3.msra.mxu0 %v81_v6  ;;  %835 = vmatprep.subr.mxu1 %v266_v15  ;;  %v68_v35 = vld [vmem:[%s1338_s0 + $0x68] sm:$0xff]  ;;  %v69_v36 = vld [vmem:[%s1338_s0 + $0x70] sm:$0xff]  ;;  %v70_v37 = vld [vmem:[%s1338_s0 + $0x78] sm:$0xff] }
  0x28   :  { %783 = vmatprep.subr.mxu0 %v80_v7  ;;  %836 = vmatpush3.msra.mxu1 %v266_v15  ;;  %v264_v38 = vld [vmem:[#allocation5 + $0x48] sm:$0xff]  ;;  %v263_v39 = vld [vmem:[#allocation5 + $0x40] sm:$0xff]  ;;  %v262_v40 = vld [vmem:[#allocation5 + $0x38] sm:$0xff] }
  0x29   :  { %784 = vmatpush3.msra.mxu0 %v80_v7  ;;  %837 = vmatprep.subr.mxu1 %v265_v17  ;;  %v261_v41 = vld [vmem:[#allocation5 + $0x30] sm:$0xff]  ;;  %v260_v42 = vld [vmem:[#allocation5 + $0x28] sm:$0xff]  ;;  %v259_v43 = vld [vmem:[#allocation5 + $0x20] sm:$0xff] }
  0x2a   :  { %785 = vmatprep.subr.mxu0 %v79_v10  ;;  %838 = vmatpush3.msra.mxu1 %v265_v17  ;;  %v258_v44 = vld [vmem:[#allocation5 + $0x18] sm:$0xff]  ;;  %v257_v45 = vld [vmem:[#allocation5 + $0x10] sm:$0xff]  ;;  %v256_v46 = vld [vmem:[#allocation5 + $0x8] sm:$0xff] }
  0x2b   :  { %786 = vmatpush3.msra.mxu0 %v79_v10  ;;  %839 = vmatprep.subr.mxu1 %v264_v38  ;;  %v255_v47 = vld [vmem:[#allocation5] sm:$0xff]  ;;  %v502_v48 = vld [vmem:[%s1343_s5 + $0x78] sm:$0xff]  ;;  %v501_v49 = vld [vmem:[%s1343_s5 + $0x70] sm:$0xff] }
  0x2c   :  { %787 = vmatprep.subr.mxu0 %v78_v12  ;;  %840 = vmatpush3.msra.mxu1 %v264_v38  ;;  %v500_v50 = vld [vmem:[%s1343_s5 + $0x68] sm:$0xff]  ;;  %v1193_v51 = vld [vmem:[%s1340_s2] ss:$0 sm:$0xff]  ;;  %v497_v38 = vld [vmem:[%s1343_s5 + $0x50] sm:$0xff] }
  0x2d   :  { %788 = vmatpush3.msra.mxu0 %v78_v12  ;;  %841 = vmatprep.subr.mxu1 %v263_v39 }
  0x2e   :  { %789 = vmatprep.subr.mxu0 %v77_v14  ;;  %842 = vmatpush3.msra.mxu1 %v263_v39  ;;  %v496_v39 = vld [vmem:[%s1343_s5 + $0x48] sm:$0xff] }
  0x2f   :  { %790 = vmatpush3.msra.mxu0 %v77_v14  ;;  %843 = vmatprep.subr.mxu1 %v262_v40 }
  0x30   :  { %791 = vmatprep.subr.mxu0 %v76_v16  ;;  %844 = vmatpush3.msra.mxu1 %v262_v40  ;;  %v495_v40 = vld [vmem:[%s1343_s5 + $0x40] sm:$0xff] }
  0x31   :  { %792 = vmatpush3.msra.mxu0 %v76_v16  ;;  %845 = vmatprep.subr.mxu1 %v261_v41 }
  0x32   :  { %793 = vmatprep.subr.mxu0 %v75_v18  ;;  %846 = vmatpush3.msra.mxu1 %v261_v41  ;;  %v494_v41 = vld [vmem:[%s1343_s5 + $0x38] sm:$0xff] }
  0x33   :  { %794 = vmatpush3.msra.mxu0 %v75_v18  ;;  %847 = vmatprep.subr.mxu1 %v260_v42 }
  0x34   :  { %795 = vmatprep.subr.mxu0 %v74_v19  ;;  %848 = vmatpush3.msra.mxu1 %v260_v42  ;;  %v493_v42 = vld [vmem:[%s1343_s5 + $0x30] sm:$0xff] }
  0x35   :  { %796 = vmatpush3.msra.mxu0 %v74_v19  ;;  %849 = vmatprep.subr.mxu1 %v259_v43 }
  0x36   :  { %797 = vmatprep.subr.mxu0 %v73_v20  ;;  %850 = vmatpush3.msra.mxu1 %v259_v43  ;;  %v492_v43 = vld [vmem:[%s1343_s5 + $0x28] sm:$0xff] }
  0x37   :  { %798 = vmatpush3.msra.mxu0 %v73_v20  ;;  %851 = vmatprep.subr.mxu1 %v258_v44 }
  0x38   :  { %799 = vmatprep.subr.mxu0 %v72_v21  ;;  %852 = vmatpush3.msra.mxu1 %v258_v44  ;;  %v491_v44 = vld [vmem:[%s1343_s5 + $0x20] sm:$0xff] }
  0x39   :  { %800 = vmatpush3.msra.mxu0 %v72_v21  ;;  %853 = vmatprep.subr.mxu1 %v257_v45 }
  0x3a   :  { %801 = vmatprep.subr.mxu0 %v71_v22  ;;  %854 = vmatpush3.msra.mxu1 %v257_v45  ;;  %v490_v45 = vld [vmem:[%s1343_s5 + $0x18] sm:$0xff] }
  0x3b   :  { %802 = vmatpush3.msra.mxu0 %v71_v22  ;;  %855 = vmatprep.subr.mxu1 %v256_v46 }
  0x3c   :  { %804 = vmatmul.mubr.f32.vlgmr.msra.gmra.mxu0 %v56_v23  ;;  %856 = vmatpush3.msra.mxu1 %v256_v46  ;;  %v489_v46 = vld [vmem:[%s1343_s5 + $0x10] sm:$0xff] }
  0x3d   :  { %806 = vmatprep.mubr.f32.mxu0 %v57_v24  ;;  %857 = vmatprep.subr.mxu1 %v255_v47 }
  0x3e   :  { %858 = vmatpush3.msra.mxu1 %v255_v47  ;;  %883 = vmatprep.subr.mxu0 %v502_v48  ;;  %v488_v47 = vld [vmem:[%s1343_s5 + $0x8] sm:$0xff] }
  0x3f   :  { %939 = vmatprep.subr.mxu1 %v502_v48  ;;  %884 = vmatpush3.msra.mxu0 %v502_v48 }
  0x40   :  { %807 = vmatmul.mubr.f32.gmra.mxu0 %v58_v25  ;;  %885 = vmatprep.subr.mxu0 %v501_v49 }
  0x41   :  { %809 = vmatprep.mubr.f32.mxu0 %v59_v26  ;;  %886 = vmatpush3.msra.mxu0 %v501_v49 }
  0x42   :  { %887 = vmatprep.subr.mxu0 %v500_v50 }
  0x43   :  { %888 = vmatpush3.msra.mxu0 %v500_v50 }
  0x44   :  { %810 = vmatmul.mubr.f32.gmra.mxu0 %v60_v27 }
  0x45   :  { %812 = vmatprep.mubr.f32.mxu0 %v61_v28 }
  0x48   :  { %813 = vmatmul.mubr.f32.gmra.mxu0 %v62_v29 }
  0x49   :  { %815 = vmatprep.mubr.f32.mxu0 %v63_v30 }
  0x4c   :  { %816 = vmatmul.mubr.f32.gmra.mxu0 %v64_v31 }
  0x4d   :  { %818 = vmatprep.mubr.f32.mxu0 %v65_v32 }
  0x50   :  { %819 = vmatmul.mubr.f32.gmra.mxu0 %v66_v33 }
  0x51   :  { %821 = vmatprep.mubr.f32.mxu0 %v67_v34 }
  0x54   :  { %822 = vmatmul.mubr.f32.gmra.mxu0 %v68_v35 }
  0x55   :  { %824 = vmatprep.mubr.f32.mxu0 %v69_v36  ;;  %v499_v36 = vld [vmem:[%s1343_s5 + $0x60] sm:$0xff] }
  0x56   :  { %889 = vmatprep.subr.mxu0 %v499_v36 }
  0x57   :  { %890 = vmatpush3.msra.mxu0 %v499_v36 }
  0x58   :  { %825 = vmatmul.mubr.f32.gmra.mxu0 %v70_v37  ;;  %v498_v37 = vld [vmem:[%s1343_s5 + $0x58] sm:$0xff] }
  0x59   :  { %891 = vmatprep.subr.mxu0 %v498_v37 }
  0x5a   :  { %892 = vmatpush3.msra.mxu0 %v498_v37 }
  0x5b   :  { %893 = vmatprep.subr.mxu0 %v497_v38 }
  0x5c   :  { %894 = vmatpush3.msra.mxu0 %v497_v38 }
  0x5d   :  { %895 = vmatprep.subr.mxu0 %v496_v39 }
  0x5e   :  { %896 = vmatpush3.msra.mxu0 %v496_v39 }
  0x5f   :  { %897 = vmatprep.subr.mxu0 %v495_v40 }
  0x60   :  { %898 = vmatpush3.msra.mxu0 %v495_v40 }
  0x61   :  { %899 = vmatprep.subr.mxu0 %v494_v41 }
  0x62   :  { %900 = vmatpush3.msra.mxu0 %v494_v41 }
  0x63   :  { %901 = vmatprep.subr.mxu0 %v493_v42 }
  0x64   :  { %902 = vmatpush3.msra.mxu0 %v493_v42 }
  0x65   :  { %903 = vmatprep.subr.mxu0 %v492_v43 }
  0x66   :  { %904 = vmatpush3.msra.mxu0 %v492_v43 }
  0x67   :  { %905 = vmatprep.subr.mxu0 %v491_v44 }
  0x68   :  { %906 = vmatpush3.msra.mxu0 %v491_v44 }
  0x69   :  { %907 = vmatprep.subr.mxu0 %v490_v45 }
  0x6a   :  { %908 = vmatpush3.msra.mxu0 %v490_v45 }
  0x6b   :  { %909 = vmatprep.subr.mxu0 %v489_v46 }
  0x6c   :  { %910 = vmatpush3.msra.mxu0 %v489_v46 }
  0x6d   :  { %911 = vmatprep.subr.mxu0 %v488_v47 }
  0x6e   :  { %912 = vmatpush3.msra.mxu0 %v488_v47 }
  0xfc   :  { %v805_v52 = vpop.f32.mrf.mxu0 }
  0xfd   :  { %v166_v53 = vadd.f32 %v805_v52, %v1193_v51 }
  0xfe   :  { %v160_v54 = vpop.f32.mrf.mxu0 }
  0xff   :  { %v161_v55 = vadd.f32 %v1193_v51, %v160_v54 }
 0x100   :  { %v808_v56 = vpop.f32.mrf.mxu0 }
 0x101   :  { %975 = vtanh.f32 %v161_v55  ;;  %v176_v57 = vadd.f32 %v808_v56, %v1193_v51 }
 0x102   :  { %977 = vtanh.f32 %v166_v53  ;;  %v170_v58 = vpop.f32.mrf.mxu0 }
 0x103   :  { %v171_v59 = vadd.f32 %v1193_v51, %v170_v58 }
 0x104   :  { %v811_v60 = vpop.f32.mrf.mxu0 }
 0x105   :  { %979 = vtanh.f32 %v171_v59  ;;  %v186_v61 = vadd.f32 %v811_v60, %v1193_v51 }
 0x106   :  { %981 = vtanh.f32 %v176_v57  ;;  %v180_v62 = vpop.f32.mrf.mxu0 }
 0x107   :  { %v181_v63 = vadd.f32 %v1193_v51, %v180_v62 }
 0x108   :  { %v814_v0 = vpop.f32.mrf.mxu0 }
 0x109   :  { %983 = vtanh.f32 %v181_v63  ;;  %v196_v1 = vadd.f32 %v814_v0, %v1193_v51 }
 0x10a   :  { %985 = vtanh.f32 %v186_v61  ;;  %v190_v2 = vpop.f32.mrf.mxu0 }
 0x10b   :  { %v191_v3 = vadd.f32 %v1193_v51, %v190_v2 }
 0x10c   :  { %v817_v4 = vpop.f32.mrf.mxu0 }
 0x10d   :  { %987 = vtanh.f32 %v191_v3  ;;  %v206_v6 = vadd.f32 %v817_v4, %v1193_v51 }
 0x10e   :  { %v976_v5 = vpop.eup %975  ;;  %989 = vtanh.f32 %v196_v1  ;;  %v200_v7 = vpop.f32.mrf.mxu0 }
 0x10f   :  { %v978_v8 = vpop.eup %977  ;;  %v201_v9 = vadd.f32 %v1193_v51, %v200_v7  ;;  %859 = vmatprep.mubr.f32.mxu1 %v976_v5 }
 0x110   :  { %v820_v10 = vpop.f32.mrf.mxu0  ;;  %860 = vmatmul.mubr.f32.vlgmr.msra.gmra.mxu1 %v978_v8 }
 0x111   :  { %991 = vtanh.f32 %v201_v9  ;;  %955 = vmatpush3.msra.mxu1 %v502_v48  ;;  %v216_v12 = vadd.f32 %v820_v10, %v1193_v51  ;;  %v487_v48 = vld [vmem:[%s1343_s5] sm:$0xff] }
 0x112   :  { %v980_v11 = vpop.eup %979  ;;  %993 = vtanh.f32 %v206_v6  ;;  %v210_v13 = vpop.f32.mrf.mxu0  ;;  %940 = vmatprep.subr.mxu1 %v501_v49  ;;  %913 = vmatprep.subr.mxu0 %v487_v48 }
 0x113   :  { %v982_v14 = vpop.eup %981  ;;  %v211_v15 = vadd.f32 %v1193_v51, %v210_v13  ;;  %862 = vmatprep.mubr.f32.mxu1 %v980_v11  ;;  %956 = vmatpush3.msra.mxu1 %v501_v49  ;;  %v1253_v49 = vld [vmem:[%s1342_s4] ss:$0 sm:$0xff] }
 0x114   :  { %v823_v16 = vpop.f32.mrf.mxu0  ;;  %863 = vmatmul.mubr.f32.gmra.mxu1 %v982_v14  ;;  %941 = vmatprep.subr.mxu1 %v500_v50 }
 0x115   :  { %995 = vtanh.f32 %v211_v15  ;;  %957 = vmatpush3.msra.mxu1 %v500_v50  ;;  %v226_v18 = vadd.f32 %v823_v16, %v1193_v51  ;;  %914 = vmatpush3.msra.mxu0 %v487_v48 }
 0x116   :  { %v984_v17 = vpop.eup %983  ;;  %997 = vtanh.f32 %v216_v12  ;;  %v220_v19 = vpop.f32.mrf.mxu0  ;;  %942 = vmatprep.subr.mxu1 %v499_v36 }
 0x117   :  { %v986_v20 = vpop.eup %985  ;;  %v221_v21 = vadd.f32 %v1193_v51, %v220_v19  ;;  %865 = vmatprep.mubr.f32.mxu1 %v984_v17  ;;  %958 = vmatpush3.msra.mxu1 %v499_v36 }
 0x118   :  { %v826_v22 = vpop.f32.mrf.mxu0  ;;  %866 = vmatmul.mubr.f32.gmra.mxu1 %v986_v20  ;;  %943 = vmatprep.subr.mxu1 %v498_v37 }
 0x119   :  { %999 = vtanh.f32 %v221_v21  ;;  %v236_v24 = vadd.f32 %v826_v22, %v1193_v51  ;;  %959 = vmatpush3.msra.mxu1 %v498_v37 }
 0x11a   :  { %v988_v23 = vpop.eup %987  ;;  %1001 = vtanh.f32 %v226_v18  ;;  %v230_v25 = vpop.f32.mrf.mxu0  ;;  %944 = vmatprep.subr.mxu1 %v497_v38 }
 0x11b   :  { %v990_v26 = vpop.eup %989  ;;  %v231_v27 = vadd.f32 %v1193_v51, %v230_v25  ;;  %868 = vmatprep.mubr.f32.mxu1 %v988_v23  ;;  %960 = vmatpush3.msra.mxu1 %v497_v38 }
 0x11c   :  { %869 = vmatmul.mubr.f32.gmra.mxu1 %v990_v26  ;;  %945 = vmatprep.subr.mxu1 %v496_v39 }
 0x11d   :  { %1003 = vtanh.f32 %v231_v27  ;;  %961 = vmatpush3.msra.mxu1 %v496_v39 }
 0x11e   :  { %v992_v28 = vpop.eup %991  ;;  %1005 = vtanh.f32 %v236_v24  ;;  %946 = vmatprep.subr.mxu1 %v495_v40 }
 0x11f   :  { %v994_v29 = vpop.eup %993  ;;  %871 = vmatprep.mubr.f32.mxu1 %v992_v28  ;;  %962 = vmatpush3.msra.mxu1 %v495_v40 }
 0x120   :  { %872 = vmatmul.mubr.f32.gmra.mxu1 %v994_v29  ;;  %947 = vmatprep.subr.mxu1 %v494_v41 }
 0x121   :  { %963 = vmatpush3.msra.mxu1 %v494_v41 }
 0x122   :  { %v996_v30 = vpop.eup %995  ;;  %948 = vmatprep.subr.mxu1 %v493_v42 }
 0x123   :  { %v998_v31 = vpop.eup %997  ;;  %874 = vmatprep.mubr.f32.mxu1 %v996_v30  ;;  %964 = vmatpush3.msra.mxu1 %v493_v42 }
 0x124   :  { %875 = vmatmul.mubr.f32.gmra.mxu1 %v998_v31  ;;  %949 = vmatprep.subr.mxu1 %v492_v43 }
 0x125   :  { %965 = vmatpush3.msra.mxu1 %v492_v43 }
 0x126   :  { %v1000_v32 = vpop.eup %999  ;;  %950 = vmatprep.subr.mxu1 %v491_v44 }
 0x127   :  { %v1002_v33 = vpop.eup %1001  ;;  %877 = vmatprep.mubr.f32.mxu1 %v1000_v32  ;;  %966 = vmatpush3.msra.mxu1 %v491_v44 }
 0x128   :  { %878 = vmatmul.mubr.f32.gmra.mxu1 %v1002_v33  ;;  %951 = vmatprep.subr.mxu1 %v490_v45 }
 0x129   :  { %967 = vmatpush3.msra.mxu1 %v490_v45 }
 0x12a   :  { %v1004_v34 = vpop.eup %1003  ;;  %952 = vmatprep.subr.mxu1 %v489_v46 }
 0x12b   :  { %v1006_v35 = vpop.eup %1005  ;;  %880 = vmatprep.mubr.f32.mxu1 %v1004_v34  ;;  %968 = vmatpush3.msra.mxu1 %v489_v46 }
 0x12c   :  { %881 = vmatmul.mubr.f32.gmra.mxu1 %v1006_v35  ;;  %953 = vmatprep.subr.mxu1 %v488_v47 }
 0x12d   :  { %969 = vmatpush3.msra.mxu1 %v488_v47 }
 0x12e   :  { %954 = vmatprep.subr.mxu1 %v487_v48 }
 0x12f   :  { %970 = vmatpush3.msra.mxu1 %v487_v48 }
 0x1d0   :  { %v861_v50 = vpop.f32.mrf.mxu1 }
 0x1d1   :  { %v350_v51 = vadd.f32 %v861_v50, %v1253_v49 }
 0x1d2   :  { %v344_v52 = vpop.f32.mrf.mxu1 }
 0x1d3   :  { %v424_v53 = vmul.f32 0.5, %v350_v51  ;;  %v345_v54 = vadd.f32 %v1253_v49, %v344_v52 }
 0x1d4   :  { %v864_v55 = vpop.f32.mrf.mxu1 }
 0x1d5   :  { %1007 = vtanh.f32 %v424_v53  ;;  %v423_v56 = vmul.f32 0.5, %v345_v54  ;;  %v360_v57 = vadd.f32 %v864_v55, %v1253_v49 }
 0x1d6   :  { %v354_v58 = vpop.f32.mrf.mxu1 }
 0x1d7   :  { %1009 = vtanh.f32 %v423_v56  ;;  %v426_v59 = vmul.f32 0.5, %v360_v57  ;;  %v355_v60 = vadd.f32 %v1253_v49, %v354_v58 }
 0x1d8   :  { %v867_v61 = vpop.f32.mrf.mxu1 }
 0x1d9   :  { %1011 = vtanh.f32 %v426_v59  ;;  %v425_v62 = vmul.f32 0.5, %v355_v60  ;;  %v370_v63 = vadd.f32 %v867_v61, %v1253_v49 }
 0x1da   :  { %v364_v0 = vpop.f32.mrf.mxu1 }
 0x1db   :  { %1013 = vtanh.f32 %v425_v62  ;;  %v428_v1 = vmul.f32 0.5, %v370_v63  ;;  %v365_v2 = vadd.f32 %v1253_v49, %v364_v0 }
 0x1dc   :  { %v870_v3 = vpop.f32.mrf.mxu1 }
 0x1dd   :  { %1015 = vtanh.f32 %v428_v1  ;;  %v427_v4 = vmul.f32 0.5, %v365_v2  ;;  %v380_v5 = vadd.f32 %v870_v3, %v1253_v49 }
 0x1de   :  { %v374_v6 = vpop.f32.mrf.mxu1 }
 0x1df   :  { %1017 = vtanh.f32 %v427_v4  ;;  %v430_v7 = vmul.f32 0.5, %v380_v5  ;;  %v375_v8 = vadd.f32 %v1253_v49, %v374_v6 }
 0x1e0   :  { %v873_v9 = vpop.f32.mrf.mxu1 }
 0x1e1   :  { %1019 = vtanh.f32 %v430_v7  ;;  %v429_v10 = vmul.f32 0.5, %v375_v8  ;;  %v390_v11 = vadd.f32 %v873_v9, %v1253_v49 }
 0x1e2   :  { %v1008_v12 = vpop.eup %1007  ;;  %v384_v13 = vpop.f32.mrf.mxu1 }
 0x1e3   :  { %1021 = vtanh.f32 %v429_v10  ;;  %v432_v14 = vmul.f32 0.5, %v390_v11  ;;  %v385_v15 = vadd.f32 %v1253_v49, %v384_v13  ;;  %v456_v17 = vmul.f32 0.5, %v1008_v12 }
 0x1e4   :  { %v1010_v16 = vpop.eup %1009  ;;  %v876_v18 = vpop.f32.mrf.mxu1 }
 0x1e5   :  { %1023 = vtanh.f32 %v432_v14  ;;  %v431_v19 = vmul.f32 0.5, %v385_v15  ;;  %v400_v20 = vadd.f32 %v876_v18, %v1253_v49  ;;  %v455_v23 = vmul.f32 0.5, %v1010_v16 }
 0x1e6   :  { %v1012_v21 = vpop.eup %1011  ;;  %v394_v22 = vpop.f32.mrf.mxu1  ;;  %v472_v27 = vadd.f32 0.5, %v456_v17  ;;  %v504_v18 = vstv %s1344_s6 }
 0x1e7   :  { %1025 = vtanh.f32 %v431_v19  ;;  %v434_v24 = vmul.f32 0.5, %v400_v20  ;;  %v395_v25 = vadd.f32 %v1253_v49, %v394_v22  ;;  %v471_v29 = vadd.f32 0.5, %v455_v23 }
 0x1e8   :  { %v1014_v26 = vpop.eup %1013  ;;  %v879_v28 = vpop.f32.mrf.mxu1  ;;  %v458_v30 = vmul.f32 0.5, %v1012_v21 }
 0x1e9   :  { %1027 = vtanh.f32 %v434_v24  ;;  %v433_v31 = vmul.f32 0.5, %v395_v25  ;;  %v410_v32 = vadd.f32 %v879_v28, %v1253_v49  ;;  %v457_v33 = vmul.f32 0.5, %v1014_v26  ;;  %915 = vmatprep.mubr.f32.mxu0 %v471_v29 }
 0x1ea   :  { %v1016_v34 = vpop.eup %1015  ;;  %v404_v35 = vpop.f32.mrf.mxu1  ;;  %916 = vmatmul.mubr.f32.vlgmr.msra.gmra.mxu0 %v472_v27  ;;  %v474_v41 = vadd.f32 0.5, %v458_v30 }
 0x1eb   :  { %1029 = vtanh.f32 %v433_v31  ;;  %v436_v36 = vmul.f32 0.5, %v410_v32  ;;  %v405_v37 = vadd.f32 %v1253_v49, %v404_v35  ;;  %v473_v38 = vadd.f32 0.5, %v457_v33 }
 0x1ec   :  { %v1018_v39 = vpop.eup %1017  ;;  %v882_v40 = vpop.f32.mrf.mxu1  ;;  %v460_v42 = vmul.f32 0.5, %v1016_v34 }
 0x1ed   :  { %1031 = vtanh.f32 %v436_v36  ;;  %v435_v43 = vmul.f32 0.5, %v405_v37  ;;  %v420_v44 = vadd.f32 %v882_v40, %v1253_v49  ;;  %918 = vmatprep.mubr.f32.mxu0 %v473_v38  ;;  %v459_v45 = vmul.f32 0.5, %v1018_v39 }
 0x1ee   :  { %v1020_v46 = vpop.eup %1019  ;;  %v414_v47 = vpop.f32.mrf.mxu1  ;;  %919 = vmatmul.mubr.f32.gmra.mxu0 %v474_v41  ;;  %v476_v53 = vadd.f32 0.5, %v460_v42 }
 0x1ef   :  { %1033 = vtanh.f32 %v435_v43  ;;  %v438_v48 = vmul.f32 0.5, %v420_v44  ;;  %v415_v50 = vadd.f32 %v1253_v49, %v414_v47  ;;  %v475_v51 = vadd.f32 0.5, %v459_v45 }
 0x1f0   :  { %v1022_v52 = vpop.eup %1021  ;;  %v462_v56 = vmul.f32 0.5, %v1020_v46 }
 0x1f1   :  { %1035 = vtanh.f32 %v438_v48  ;;  %v437_v54 = vmul.f32 0.5, %v415_v50  ;;  %921 = vmatprep.mubr.f32.mxu0 %v475_v51  ;;  %v461_v55 = vmul.f32 0.5, %v1022_v52 }
 0x1f2   :  { %v1024_v57 = vpop.eup %1023  ;;  %922 = vmatmul.mubr.f32.gmra.mxu0 %v476_v53  ;;  %v478_v61 = vadd.f32 0.5, %v462_v56 }
 0x1f3   :  { %1037 = vtanh.f32 %v437_v54  ;;  %v477_v58 = vadd.f32 0.5, %v461_v55  ;;  %v464_v60 = vmul.f32 0.5, %v1024_v57 }
 0x1f4   :  { %v1026_v59 = vpop.eup %1025 }
 0x1f5   :  { %924 = vmatprep.mubr.f32.mxu0 %v477_v58  ;;  %v463_v62 = vmul.f32 0.5, %v1026_v59  ;;  %v480_v1 = vadd.f32 0.5, %v464_v60 }
 0x1f6   :  { %v1028_v63 = vpop.eup %1027  ;;  %925 = vmatmul.mubr.f32.gmra.mxu0 %v478_v61 }
 0x1f7   :  { %v479_v49 = vadd.f32 0.5, %v463_v62  ;;  %v466_v2 = vmul.f32 0.5, %v1028_v63 }
 0x1f8   :  { %v1030_v0 = vpop.eup %1029 }
 0x1f9   :  { %927 = vmatprep.mubr.f32.mxu1 %v479_v49  ;;  %v465_v3 = vmul.f32 0.5, %v1030_v0  ;;  %v482_v7 = vadd.f32 0.5, %v466_v2 }
 0x1fa   :  { %v1032_v4 = vpop.eup %1031  ;;  %928 = vmatmul.mubr.f32.vlgmr.msra.gmra.mxu1 %v480_v1 }
 0x1fb   :  { %v481_v5 = vadd.f32 0.5, %v465_v3  ;;  %v468_v8 = vmul.f32 0.5, %v1032_v4 }
 0x1fc   :  { %v1034_v6 = vpop.eup %1033 }
 0x1fd   :  { %930 = vmatprep.mubr.f32.mxu1 %v481_v5  ;;  %v467_v9 = vmul.f32 0.5, %v1034_v6  ;;  %v484_v13 = vadd.f32 0.5, %v468_v8 }
 0x1fe   :  { %v1036_v10 = vpop.eup %1035  ;;  %931 = vmatmul.mubr.f32.gmra.mxu1 %v482_v7 }
 0x1ff   :  { %v483_v11 = vadd.f32 0.5, %v467_v9  ;;  %v470_v14 = vmul.f32 0.5, %v1036_v10 }
 0x200   :  { %v1038_v12 = vpop.eup %1037 }
 0x201   :  { %933 = vmatprep.mubr.f32.mxu1 %v483_v11  ;;  %v469_v15 = vmul.f32 0.5, %v1038_v12  ;;  %v486_v17 = vadd.f32 0.5, %v470_v14 }
 0x202   :  { %934 = vmatmul.mubr.f32.gmra.mxu1 %v484_v13 }
 0x203   :  { %v485_v16 = vadd.f32 0.5, %v469_v15 }
 0x205   :  { %936 = vmatprep.mubr.f32.mxu1 %v485_v16 }
 0x206   :  { %937 = vmatmul.mubr.f32.gmra.mxu1 %v486_v17 }
 0x2aa   :  { %v917_v19 = vpop.f32.mrf.mxu0 }
 0x2ab   :  { %v577_v20 = vadd.f32 %v917_v19, %v504_v18 }
 0x2ac   :  { %v571_v21 = vpop.f32.mrf.mxu0 }
 0x2ad   :  { %652 = vst.msk [vmem:[%s1345_s7 + $0x8] sm:$0xff] %vm650_vm0, %v577_v20  ;;  %v572_v22 = vadd.f32 %v571_v21, %v504_v18 }
 0x2ae   :  { %v920_v23 = vpop.f32.mrf.mxu0 }
 0x2af   :  { %651 = vst.msk [vmem:[%s1345_s7] sm:$0xff] %vm650_vm0, %v572_v22  ;;  %v587_v24 = vadd.f32 %v920_v23, %v504_v18 }
 0x2b0   :  { %v581_v25 = vpop.f32.mrf.mxu0 }
 0x2b1   :  { %654 = vst.msk [vmem:[%s1345_s7 + $0x18] sm:$0xff] %vm650_vm0, %v587_v24  ;;  %v582_v26 = vadd.f32 %v581_v25, %v504_v18 }
 0x2b2   :  { %v923_v27 = vpop.f32.mrf.mxu0 }
 0x2b3   :  { %653 = vst.msk [vmem:[%s1345_s7 + $0x10] sm:$0xff] %vm650_vm0, %v582_v26  ;;  %v597_v28 = vadd.f32 %v923_v27, %v504_v18 }
 0x2b4   :  { %v591_v29 = vpop.f32.mrf.mxu0 }
 0x2b5   :  { %656 = vst.msk [vmem:[%s1345_s7 + $0x28] sm:$0xff] %vm650_vm0, %v597_v28  ;;  %v592_v30 = vadd.f32 %v591_v29, %v504_v18 }
 0x2b6   :  { %v926_v31 = vpop.f32.mrf.mxu0 }
 0x2b7   :  { %655 = vst.msk [vmem:[%s1345_s7 + $0x20] sm:$0xff] %vm650_vm0, %v592_v30  ;;  %v607_v32 = vadd.f32 %v926_v31, %v504_v18 }
 0x2b8   :  { %v601_v33 = vpop.f32.mrf.mxu0 }
 0x2b9   :  { %658 = vst.msk [vmem:[%s1345_s7 + $0x38] sm:$0xff] %vm650_vm0, %v607_v32  ;;  %v602_v34 = vadd.f32 %v601_v33, %v504_v18 }
 0x2ba   :  { %v929_v35 = vpop.f32.mrf.mxu1 }
 0x2bb   :  { %v617_v36 = vadd.f32 %v929_v35, %v504_v18  ;;  %657 = vst.msk [vmem:[%s1345_s7 + $0x30] sm:$0xff] %vm650_vm0, %v602_v34 }
 0x2bc   :  { %v611_v37 = vpop.f32.mrf.mxu1 }
 0x2bd   :  { %660 = vst.msk [vmem:[%s1345_s7 + $0x48] sm:$0xff] %vm650_vm0, %v617_v36  ;;  %v612_v38 = vadd.f32 %v611_v37, %v504_v18 }
 0x2be   :  { %v932_v39 = vpop.f32.mrf.mxu1 }
 0x2bf   :  { %659 = vst.msk [vmem:[%s1345_s7 + $0x40] sm:$0xff] %vm650_vm0, %v612_v38  ;;  %v627_v40 = vadd.f32 %v932_v39, %v504_v18 }
 0x2c0   :  { %v621_v41 = vpop.f32.mrf.mxu1 }
 0x2c1   :  { %662 = vst.msk [vmem:[%s1345_s7 + $0x58] sm:$0xff] %vm650_vm0, %v627_v40  ;;  %v622_v42 = vadd.f32 %v621_v41, %v504_v18 }
 0x2c2   :  { %v935_v43 = vpop.f32.mrf.mxu1 }
 0x2c3   :  { %661 = vst.msk [vmem:[%s1345_s7 + $0x50] sm:$0xff] %vm650_vm0, %v622_v42  ;;  %v637_v44 = vadd.f32 %v935_v43, %v504_v18 }
 0x2c4   :  { %v631_v45 = vpop.f32.mrf.mxu1 }
 0x2c5   :  { %664 = vst.msk [vmem:[%s1345_s7 + $0x68] sm:$0xff] %vm650_vm0, %v637_v44  ;;  %v632_v46 = vadd.f32 %v631_v45, %v504_v18 }
 0x2c6   :  { %v938_v47 = vpop.f32.mrf.mxu1 }
 0x2c7   :  { %663 = vst.msk [vmem:[%s1345_s7 + $0x60] sm:$0xff] %vm650_vm0, %v632_v46  ;;  %v647_v48 = vadd.f32 %v938_v47, %v504_v18 }
 0x2c8   :  { %v641_v50 = vpop.f32.mrf.mxu1 }
 0x2c9   :  { %666 = vst.msk [vmem:[%s1345_s7 + $0x78] sm:$0xff] %vm650_vm0, %v647_v48  ;;  %v642_v51 = vadd.f32 %v641_v50, %v504_v18 }
 0x2cb   :  { %665 = vst.msk [vmem:[%s1345_s7 + $0x70] sm:$0xff] %vm650_vm0, %v642_v51 }
 0x2cc   :  { %671 = vsyncpa [#allocation4], 1 }
 0x2cd   :  { %672 = vsyncpa [#allocation6], 1 }

</bundles_post_ra>
